<compile_context>
chip_gen: v7x
topology: tpu7x:2x2x1
jax: 0.10.0
libtpu: 0.0.40
codegen_flags: <defaults>
</compile_context>

<pallas_src>
import jax
import jax.numpy as jnp
from jax.experimental import pallas as pl
from jax.experimental.pallas import tpu as pltpu


def _make_sepconv_kernel(W, KH, KW, HW):
    """Kernel factory. W/KH/KW/HW are static Python ints (needed for tap offsets)."""

    def kernel(x_ref, dw_ref, pw_ref, o_ref):
        # x_ref : VMEM (N*Cin, HWp)        input, flat H*W on lanes, zero-padded
        #                                  on the lane axis so all tap windows
        #                                  are in bounds.  Rows are n-major,
        #                                  c-minor (pure reshape of NCHW).
        # dw_ref: VMEM (N*Cin, KH*KW)      depthwise taps, batch-tiled.
        # pw_ref: VMEM (N*Cout, N*Cin)     block-diagonal pointwise weights.
        # o_ref : VMEM (N*Cout, HW)        output, lane-dense, rows n-major,
        #                                  p-minor (pure reshape to NCHW).

        dwt = dw_ref[...].astype(jnp.float32)        # (NCin, KH*KW), one vreg

        # ---- Depthwise conv (valid, stride 1, dilation 1) -------------------
        # For flat index idx = i*W + j, tap (kh, kw) reads x_flat[idx + kh*W+kw].
        # One shifted window per tap covers every batch and channel at once;
        # the multiply is an (8,1) weight column broadcast against the (8,HW)
        # window on the VPU.  Positions with j >= Wo or i >= Ho are garbage and
        # get cropped in the wrapper.
        acc = None
        for k in range(KH * KW):
            kh, kw = divmod(k, KW)
            d = kh * W + kw
            win = x_ref[:, pl.ds(d, HW)].astype(jnp.float32)   # (NCin, HW)
            term = win * dwt[:, k][:, None]
            acc = term if acc is None else acc + term

        # ---- Pointwise 1x1 conv (block-diagonal over batch) on the MXU ------
        # (N*Cout, N*Cin) @ (N*Cin, HW) -> (N*Cout, HW); the cross-sublane
        # channel contraction happens on the MXU while the VPU handled the
        # depthwise taps.
        out = jnp.dot(pw_ref[...].astype(jnp.float32), acc,
                      preferred_element_type=jnp.float32)
        o_ref[...] = out.astype(o_ref.dtype)          # full-tile unmasked store

    return kernel


def separable_conv2d_same(x_nchw, dw_weight, pw_weight):
    """Forward pass equivalent to the PyTorch module (stride=1, padding=0).

    x_nchw   : (N, Cin, H, W)
    dw_weight: (Cin, 1, KH, KW)   depthwise conv weight (PyTorch layout)
    pw_weight: (Cout, Cin, 1, 1)  pointwise conv weight (PyTorch layout)
    returns  : (N, Cout, Ho, Wo)  with Ho = H - KH + 1, Wo = W - KW + 1
    """
    N, Cin, H, W = x_nchw.shape
    KH, KW = dw_weight.shape[2], dw_weight.shape[3]
    Cout = pw_weight.shape[0]
    Ho, Wo = H - KH + 1, W - KW + 1
    HW = H * W

    # Pad the flat spatial axis so every shifted tap window is in bounds and
    # the lane extent is a multiple of 128.
    d_max = (KH - 1) * W + (KW - 1)
    HWp = ((HW + d_max + 127) // 128) * 128

    # (N*Cin, HWp): zero-copy reshape of NCHW (n-major, c-minor rows) + lane pad.
    x_flat = x_nchw.reshape(N * Cin, HW)
    x_flat = jnp.pad(x_flat, ((0, 0), (0, HWp - HW)))

    # Depthwise taps, tiled over batch to match the (N*Cin) row order.
    dw_taps = dw_weight[:, 0, :, :].reshape(Cin, KH * KW).astype(jnp.float32)
    dw_tile = jnp.tile(dw_taps, (N, 1))                         # (N*Cin, KH*KW)

    # Block-diagonal pointwise weights: pw_block[n*Cout+p, m*Cin+c] =
    # (n == m) * pw[p, c].
    pw_mat = pw_weight[:, :, 0, 0].astype(jnp.float32)          # (Cout, Cin)
    eye = jnp.eye(N, dtype=jnp.float32)
    pw_block = jnp.einsum('nm,pc->npmc', eye, pw_mat).reshape(N * Cout, N * Cin)

    itemsize = jnp.dtype(x_nchw.dtype).itemsize
    flops = 2 * N * HW * Cin * KH * KW + 2 * N * HW * Cin * Cout
    bytes_accessed = (N * Cin * HW * itemsize
                      + dw_tile.size * 4
                      + pw_block.size * 4
                      + N * Cout * HW * itemsize)

    out_flat = pl.pallas_call(
        _make_sepconv_kernel(W, KH, KW, HW),
        out_shape=jax.ShapeDtypeStruct((N * Cout, HW), x_nchw.dtype),
        in_specs=[
            pl.BlockSpec(memory_space=pltpu.MemorySpace.VMEM),   # x (whole array)
            pl.BlockSpec(memory_space=pltpu.MemorySpace.VMEM),   # depthwise taps
            pl.BlockSpec(memory_space=pltpu.MemorySpace.VMEM),   # pointwise block
        ],
        out_specs=pl.BlockSpec(memory_space=pltpu.MemorySpace.VMEM),
        cost_estimate=pl.CostEstimate(
            flops=flops, transcendentals=0, bytes_accessed=bytes_accessed),
    )(x_flat, dw_tile, pw_block)

    # (N*Cout, HW) -> (N, Cout, H, W) is a zero-copy reshape; crop to the valid
    # conv output (positions with j >= Wo / i >= Ho hold wrapped/pad garbage).
    out = out_flat.reshape(N, Cout, H, W)
    return out[:, :, :Ho, :Wo]


def _reference(x_nchw, dw_weight, pw_weight):
    """Plain-JAX reference matching PyTorch semantics (sanity check)."""
    Cin = x_nchw.shape[1]
    depth = jax.lax.conv_general_dilated(
        x_nchw, dw_weight, window_strides=(1, 1), padding="VALID",
        dimension_numbers=("NCHW", "OIHW", "NCHW"),
        feature_group_count=Cin)
    point = jax.lax.conv_general_dilated(
        depth, pw_weight, window_strides=(1, 1), padding="VALID",
        dimension_numbers=("NCHW", "OIHW", "NCHW"))
    return point


if __name__ == "__main__":
    # Module config: inplanes=4, planes=8, kernel_size=3, stride=1, dilation=1
    inplanes, planes, ksize = 4, 8, 3
    N, H, W = 2, 16, 16

    key = jax.random.PRNGKey(0)
    kx, kd, kp = jax.random.split(key, 3)

    x = jax.random.normal(kx, (N, inplanes, H, W), dtype=jnp.float32)
    dw_weight = 0.1 * jax.random.normal(kd, (inplanes, 1, ksize, ksize),
                                        dtype=jnp.float32)
    pw_weight = 0.1 * jax.random.normal(kp, (planes, inplanes, 1, 1),
                                        dtype=jnp.float32)

    fwd = jax.jit(separable_conv2d_same)
    out = fwd(x, dw_weight, pw_weight)
    out = jax.block_until_ready(out)

    ref = _reference(x, dw_weight, pw_weight)
    assert out.shape == ref.shape == (N, planes, H - ksize + 1, W - ksize + 1)
    assert jnp.allclose(out, ref, atol=1e-4, rtol=1e-4)

    print("KERNEL_OK")
</pallas_src>

<mosaic_0001>
module attributes {stable_mosaic.version = 11 : i64} {
  func.func @kernel(%arg0: memref<8x384xf32, #tpu.memory_space<vmem>>, %arg1: memref<8x9xf32, #tpu.memory_space<vmem>>, %arg2: memref<16x8xf32, #tpu.memory_space<vmem>>, %arg3: memref<16x256xf32, #tpu.memory_space<vmem>>) attributes {dimension_semantics = [], scalar_prefetch = 0 : i64, scratch_operands = 0 : i64, tpu.core_type = #tpu.core_type<tc>} {
    %c0 = arith.constant 0 : index
    %c0_0 = arith.constant 0 : index
    %0 = vector.load %arg1[%c0, %c0_0] : memref<8x9xf32, #tpu.memory_space<vmem>>, vector<8x9xf32>
    %c0_1 = arith.constant 0 : index
    %c0_2 = arith.constant 0 : index
    %1 = vector.load %arg0[%c0_1, %c0_2] : memref<8x384xf32, #tpu.memory_space<vmem>>, vector<8x256xf32>
    %2 = vector.extract_strided_slice %0 {offsets = [0, 0], sizes = [8, 1], strides = [1, 1]} : vector<8x9xf32> to vector<8x1xf32>
    %3 = vector.shape_cast %2 : vector<8x1xf32> to vector<8xf32>
    %4 = vector.shape_cast %3 : vector<8xf32> to vector<8x1xf32>
    %5 = vector.broadcast %4 : vector<8x1xf32> to vector<8x256xf32>
    %6 = arith.mulf %1, %5 : vector<8x256xf32>
    %c0_3 = arith.constant 0 : index
    %c1 = arith.constant 1 : index
    %7 = vector.load %arg0[%c0_3, %c1] : memref<8x384xf32, #tpu.memory_space<vmem>>, vector<8x256xf32>
    %8 = vector.extract_strided_slice %0 {offsets = [0, 1], sizes = [8, 1], strides = [1, 1]} : vector<8x9xf32> to vector<8x1xf32>
    %9 = vector.shape_cast %8 : vector<8x1xf32> to vector<8xf32>
    %10 = vector.shape_cast %9 : vector<8xf32> to vector<8x1xf32>
    %11 = vector.broadcast %10 : vector<8x1xf32> to vector<8x256xf32>
    %12 = arith.mulf %7, %11 : vector<8x256xf32>
    %13 = arith.addf %6, %12 : vector<8x256xf32>
    %c0_4 = arith.constant 0 : index
    %c2 = arith.constant 2 : index
    %14 = vector.load %arg0[%c0_4, %c2] : memref<8x384xf32, #tpu.memory_space<vmem>>, vector<8x256xf32>
    %15 = vector.extract_strided_slice %0 {offsets = [0, 2], sizes = [8, 1], strides = [1, 1]} : vector<8x9xf32> to vector<8x1xf32>
    %16 = vector.shape_cast %15 : vector<8x1xf32> to vector<8xf32>
    %17 = vector.shape_cast %16 : vector<8xf32> to vector<8x1xf32>
    %18 = vector.broadcast %17 : vector<8x1xf32> to vector<8x256xf32>
    %19 = arith.mulf %14, %18 : vector<8x256xf32>
    %20 = arith.addf %13, %19 : vector<8x256xf32>
    %c0_5 = arith.constant 0 : index
    %c16 = arith.constant 16 : index
    %21 = vector.load %arg0[%c0_5, %c16] : memref<8x384xf32, #tpu.memory_space<vmem>>, vector<8x256xf32>
    %22 = vector.extract_strided_slice %0 {offsets = [0, 3], sizes = [8, 1], strides = [1, 1]} : vector<8x9xf32> to vector<8x1xf32>
    %23 = vector.shape_cast %22 : vector<8x1xf32> to vector<8xf32>
    %24 = vector.shape_cast %23 : vector<8xf32> to vector<8x1xf32>
    %25 = vector.broadcast %24 : vector<8x1xf32> to vector<8x256xf32>
    %26 = arith.mulf %21, %25 : vector<8x256xf32>
    %27 = arith.addf %20, %26 : vector<8x256xf32>
    %c0_6 = arith.constant 0 : index
    %c17 = arith.constant 17 : index
    %28 = vector.load %arg0[%c0_6, %c17] : memref<8x384xf32, #tpu.memory_space<vmem>>, vector<8x256xf32>
    %29 = vector.extract_strided_slice %0 {offsets = [0, 4], sizes = [8, 1], strides = [1, 1]} : vector<8x9xf32> to vector<8x1xf32>
    %30 = vector.shape_cast %29 : vector<8x1xf32> to vector<8xf32>
    %31 = vector.shape_cast %30 : vector<8xf32> to vector<8x1xf32>
    %32 = vector.broadcast %31 : vector<8x1xf32> to vector<8x256xf32>
    %33 = arith.mulf %28, %32 : vector<8x256xf32>
    %34 = arith.addf %27, %33 : vector<8x256xf32>
    %c0_7 = arith.constant 0 : index
    %c18 = arith.constant 18 : index
    %35 = vector.load %arg0[%c0_7, %c18] : memref<8x384xf32, #tpu.memory_space<vmem>>, vector<8x256xf32>
    %36 = vector.extract_strided_slice %0 {offsets = [0, 5], sizes = [8, 1], strides = [1, 1]} : vector<8x9xf32> to vector<8x1xf32>
    %37 = vector.shape_cast %36 : vector<8x1xf32> to vector<8xf32>
    %38 = vector.shape_cast %37 : vector<8xf32> to vector<8x1xf32>
    %39 = vector.broadcast %38 : vector<8x1xf32> to vector<8x256xf32>
    %40 = arith.mulf %35, %39 : vector<8x256xf32>
    %41 = arith.addf %34, %40 : vector<8x256xf32>
    %c0_8 = arith.constant 0 : index
    %c32 = arith.constant 32 : index
    %42 = vector.load %arg0[%c0_8, %c32] : memref<8x384xf32, #tpu.memory_space<vmem>>, vector<8x256xf32>
    %43 = vector.extract_strided_slice %0 {offsets = [0, 6], sizes = [8, 1], strides = [1, 1]} : vector<8x9xf32> to vector<8x1xf32>
    %44 = vector.shape_cast %43 : vector<8x1xf32> to vector<8xf32>
    %45 = vector.shape_cast %44 : vector<8xf32> to vector<8x1xf32>
    %46 = vector.broadcast %45 : vector<8x1xf32> to vector<8x256xf32>
    %47 = arith.mulf %42, %46 : vector<8x256xf32>
    %48 = arith.addf %41, %47 : vector<8x256xf32>
    %c0_9 = arith.constant 0 : index
    %c33 = arith.constant 33 : index
    %49 = vector.load %arg0[%c0_9, %c33] : memref<8x384xf32, #tpu.memory_space<vmem>>, vector<8x256xf32>
    %50 = vector.extract_strided_slice %0 {offsets = [0, 7], sizes = [8, 1], strides = [1, 1]} : vector<8x9xf32> to vector<8x1xf32>
    %51 = vector.shape_cast %50 : vector<8x1xf32> to vector<8xf32>
    %52 = vector.shape_cast %51 : vector<8xf32> to vector<8x1xf32>
    %53 = vector.broadcast %52 : vector<8x1xf32> to vector<8x256xf32>
    %54 = arith.mulf %49, %53 : vector<8x256xf32>
    %55 = arith.addf %48, %54 : vector<8x256xf32>
    %c0_10 = arith.constant 0 : index
    %c34 = arith.constant 34 : index
    %56 = vector.load %arg0[%c0_10, %c34] : memref<8x384xf32, #tpu.memory_space<vmem>>, vector<8x256xf32>
    %57 = vector.extract_strided_slice %0 {offsets = [0, 8], sizes = [8, 1], strides = [1, 1]} : vector<8x9xf32> to vector<8x1xf32>
    %58 = vector.shape_cast %57 : vector<8x1xf32> to vector<8xf32>
    %59 = vector.shape_cast %58 : vector<8xf32> to vector<8x1xf32>
    %60 = vector.broadcast %59 : vector<8x1xf32> to vector<8x256xf32>
    %61 = arith.mulf %56, %60 : vector<8x256xf32>
    %62 = arith.addf %55, %61 : vector<8x256xf32>
    %c0_11 = arith.constant 0 : index
    %c0_12 = arith.constant 0 : index
    %63 = vector.load %arg2[%c0_11, %c0_12] : memref<16x8xf32, #tpu.memory_space<vmem>>, vector<16x8xf32>
    %cst = arith.constant dense<0.000000e+00> : vector<16x256xf32>
    %64 = tpu.matmul %63, %62, %cst {dimension_numbers = #tpu.dot_dimension_numbers<[1], [0], [0], [1], [0, 0, 1, 1], [], []>} : vector<16x8xf32>, vector<8x256xf32>, vector<16x256xf32> -> vector<16x256xf32>
    %c0_13 = arith.constant 0 : index
    %c0_14 = arith.constant 0 : index
    %65 = vector.load %arg3[%c0_13, %c0_14] : memref<16x256xf32, #tpu.memory_space<vmem>>, vector<16x256xf32>
    tpu.vector_store %arg3[%c0_13, %c0_14], %64 {strides = array<i32>} : memref<16x256xf32, #tpu.memory_space<vmem>>, vector<16x256xf32>,
    return
  }
}

</mosaic_0001>

<bundles_post_ra>
// kernel: separable_conv2d_same.1
= control target key start
LH: loop header
LB: loop body
LE: loop exit
PB: predicated region body
PF: predicated region fallthrough
CT: control target
= control target key end

     0   :  { %v337_v0 = vmov 1   ;;  %v338_v2 = vmov 3   ;;  %v339_v3 = vmov 2   ;;  %v340_v4 = vmov 4   ;;  %s346_s19 = smov 127   ;;  %s347_s20 = smov 126   ;;  %s427_s1 = inlined_call_operand.vmem [shape: f32[8,9], index: 1, kind: input, shape index: {}]   ;;  %s428_s0 = inlined_call_operand.vmem [shape: f32[8,384], index: 0, kind: input, shape index: {}]   ;;  %s429_s2 = inlined_call_operand.vmem [shape: f32[16,8], index: 2, kind: input, shape index: {}]   ;;  %s430_s3 = inlined_call_operand.vmem [shape: f32[16,256], index: 3, kind: output, shape index: {}]  }
   0x1   :  { %327 = vset.pattern.permute.xlu0 %v337_v0  ;;  %v14_v1 = vld [vmem:[%s427_s1] sm:$0xff]  ;;  %329 = vset.pattern.permute.xlu1 %v338_v2  ;;  %v341_v5 = vmov 5   ;;  %v342_v6 = vmov 6   ;;  %v343_v7 = vmov 7   ;;  %v344_v8 = vmov 0   ;;  %v386_v11 = vld [vmem:[%s428_s0 + $0x8] sm:$0xff] }
   0x2   :  { %28 = vperm.xlu0 %327, %v14_v1   ;;  %74 = vperm.xlu1 %329, %v14_v1   ;;  %v345_v9 = vmov 8   ;;  %v381_v10 = vld [vmem:[%s428_s0] sm:$0xff]  ;;  %v26_v15 = vld [vmem:[%s428_s0 + $0x10] sm:$0xff]  ;;  %s348_s21 = smov 112   ;;  %s349_s0 = smov 111   ;;  %v353_v43 = vmov 0.0  }
   0x3   :  { %s350_s22 = smov 110   ;;  %s351_s23 = smov 96   ;;  %284 = vmatprep.mubr.f32.mxu0 %v353_v43  ;;  %290 = vmatprep.mubr.f32.mxu1 %v353_v43  ;;  %vm43_vm0 = vcmask 1039360   ;;  %vm66_vm1 = vcmask 1031168   ;;  %vm89_vm2 = vcmask 916480   ;;  %vm112_vm3 = vcmask 908288  }
   0x4   :  { %s352_s24 = smov 95   ;;  %s354_s25 = smov 94   ;;  %vm135_vm4 = vcmask 900096   ;;  %vm158_vm5 = vcmask 785408   ;;  %vm181_vm6 = vcmask 777216   ;;  %vm204_vm7 = vcmask 769024  }
   0x5   :  { %vm213_vm8 = vcmask 64512  }
   0x6   :  { %328 = vset.pattern.permute.xlu0 %v339_v3  ;;  %330 = vset.pattern.permute.xlu1 %v340_v4 }
   0x7   :  { %51 = vperm.xlu0 %328, %v14_v1   ;;  %97 = vperm.xlu1 %330, %v14_v1  }
   0xb   :  { %331 = vset.pattern.permute.xlu1 %v341_v5  ;;  %332 = vset.pattern.permute.xlu0 %v342_v6 }
   0xc   :  { %120 = vperm.xlu1 %331, %v14_v1   ;;  %143 = vperm.xlu0 %332, %v14_v1  }
  0x10   :  { %333 = vset.pattern.permute.xlu1 %v343_v7  ;;  %335 = vset.pattern.permute.xlu0 %v344_v8 }
  0x11   :  { %166 = vperm.xlu1 %333, %v14_v1   ;;  %19 = vperm.xlu0 %335, %v14_v1  }
  0x15   :  { %334 = vset.pattern.permute.xlu1 %v345_v9  ;;  %336 = vset.pattern.permute.xlu0 %v345_v9 }
  0x16   :  { %189 = vperm.xlu1 %334, %v14_v1  }
  0x81   :  { %v29_v12 = vpop.permute.xlu0 %28  ;;  %v75_v18 = vpop.permute.xlu1 %74 }
  0x82   :  { %v31_v13 = vmul.f32 %v29_v12, %v381_v10  ;;  %v32_v14 = vmul.f32 %v29_v12, %v386_v11  ;;  %v33_v16 = vmul.f32 %v29_v12, %v26_v15  ;;  %v78_v21 = vmul.f32 %v75_v18, %v386_v11 }
  0x83   :  { %v77_v23 = vmul.f32 %v75_v18, %v381_v10  ;;  %v79_v25 = vmul.f32 %v75_v18, %v26_v15 }
  0x84   :  { %39 = vrot.lane.b32.xlu1 %v32_v14, %s346_s19  ;;  %37 = vrot.lane.b32.xlu0 %v31_v13, %s346_s19 }
  0x86   :  { %v52_v17 = vpop.permute.xlu0 %51  ;;  %v98_v22 = vpop.permute.xlu1 %97 }
  0x87   :  { %v56_v19 = vmul.f32 %v52_v17, %v26_v15  ;;  %v55_v20 = vmul.f32 %v52_v17, %v386_v11  ;;  %v54_v24 = vmul.f32 %v52_v17, %v381_v10  ;;  %v102_v26 = vmul.f32 %v98_v22, %v26_v15 }
  0x88   :  { %41 = vrot.lane.b32.xlu1 %v33_v16, %s346_s19  ;;  %v101_v28 = vmul.f32 %v98_v22, %v386_v11  ;;  %v100_v31 = vmul.f32 %v98_v22, %v381_v10 }
  0x89   :  { %64 = vrot.lane.b32.xlu0 %v56_v19, %s347_s20 }
  0x8b   :  { %v121_v27 = vpop.permute.xlu1 %120  ;;  %v144_v32 = vpop.permute.xlu0 %143 }
  0x8c   :  { %62 = vrot.lane.b32.xlu1 %v55_v20, %s347_s20  ;;  %v124_v29 = vmul.f32 %v121_v27, %v386_v11  ;;  %v123_v30 = vmul.f32 %v121_v27, %v381_v10  ;;  %v125_v33 = vmul.f32 %v121_v27, %v26_v15  ;;  %v148_v34 = vmul.f32 %v144_v32, %v26_v15 }
  0x8d   :  { %85 = vrot.lane.b32.xlu0 %v78_v21, %s348_s21  ;;  %v147_v36 = vmul.f32 %v144_v32, %v386_v11  ;;  %v146_v39 = vmul.f32 %v144_v32, %v381_v10 }
  0x90   :  { %60 = vrot.lane.b32.xlu1 %v54_v24, %s347_s20  ;;  %v167_v35 = vpop.permute.xlu1 %166  ;;  %v20_v46 = vpop.permute.xlu0 %19 }
  0x91   :  { %83 = vrot.lane.b32.xlu0 %v77_v23, %s348_s21  ;;  %v170_v37 = vmul.f32 %v167_v35, %v386_v11  ;;  %v169_v38 = vmul.f32 %v167_v35, %v381_v10  ;;  %v171_v41 = vmul.f32 %v167_v35, %v26_v15  ;;  %v22_v61 = vmul.f32 %v381_v10, %v20_v46 }
  0x92   :  { %v23_v63 = vmul.f32 %v386_v11, %v20_v46 }
  0x94   :  { %87 = vrot.lane.b32.xlu1 %v79_v25, %s348_s21 }
  0x95   :  { %110 = vrot.lane.b32.xlu0 %v102_v26, %s349_s0  ;;  %v190_v40 = vpop.permute.xlu1 %189 }
  0x96   :  { %v194_v42 = vmul.f32 %v190_v40, %v26_v15  ;;  %v193_v44 = vmul.f32 %v190_v40, %v386_v11  ;;  %v192_v45 = vmul.f32 %v190_v40, %v381_v10 }
  0x98   :  { %108 = vrot.lane.b32.xlu1 %v101_v28, %s349_s0 }
  0x99   :  { %131 = vrot.lane.b32.xlu0 %v124_v29, %s350_s22 }
  0x9c   :  { %106 = vrot.lane.b32.xlu1 %v100_v31, %s349_s0 }
  0x9d   :  { %129 = vrot.lane.b32.xlu0 %v123_v30, %s350_s22 }
  0xa0   :  { %133 = vrot.lane.b32.xlu1 %v125_v33, %s350_s22 }
  0xa1   :  { %156 = vrot.lane.b32.xlu0 %v148_v34, %s351_s23 }
  0xa4   :  { %154 = vrot.lane.b32.xlu1 %v147_v36, %s351_s23 }
  0xa5   :  { %177 = vrot.lane.b32.xlu0 %v170_v37, %s352_s24 }
  0xa8   :  { %152 = vrot.lane.b32.xlu1 %v146_v39, %s351_s23 }
  0xa9   :  { %175 = vrot.lane.b32.xlu0 %v169_v38, %s352_s24 }
  0xac   :  { %179 = vrot.lane.b32.xlu1 %v171_v41, %s352_s24  ;;  %v211_v41 = vld [vmem:[%s429_s2] sm:$0xff] }
  0xad   :  { %202 = vrot.lane.b32.xlu0 %v194_v42, %s354_s25  ;;  %v212_v42 = vld [vmem:[%s429_s2 + $0x8] sm:$0xff] }
  0xb0   :  { %200 = vrot.lane.b32.xlu1 %v193_v44, %s354_s25 }
  0xb4   :  { %198 = vrot.lane.b32.xlu1 %v192_v45, %s354_s25 }
  0xf6   :  { %v40_v47 = vpop.permute.xlu1 %39  ;;  %v38_v48 = vpop.permute.xlu0 %37 }
  0xf7   :  { %v44_v62 = vsel %vm43_vm0, %v38_v48, %v40_v47 }
  0xf8   :  { %v48_v4 = vadd.f32 %v44_v62, %v22_v61 }
  0xfa   :  { %v42_v49 = vpop.permute.xlu1 %41 }
  0xfb   :  { %v65_v50 = vpop.permute.xlu0 %64  ;;  %v45_v1 = vsel %vm43_vm0, %v40_v47, %v42_v49 }
  0xfc   :  { %v49_v6 = vadd.f32 %v45_v1, %v23_v63 }
  0xfe   :  { %v63_v51 = vpop.permute.xlu1 %62 }
  0xff   :  { %v86_v52 = vpop.permute.xlu0 %85  ;;  %v68_v5 = vsel %vm66_vm1, %v63_v51, %v65_v50 }
 0x100   :  { %v72_v14 = vadd.f32 %v68_v5, %v49_v6 }
 0x102   :  { %v61_v53 = vpop.permute.xlu1 %60 }
 0x103   :  { %v84_v54 = vpop.permute.xlu0 %83  ;;  %v67_v2 = vsel %vm66_vm1, %v61_v53, %v63_v51 }
 0x104   :  { %v71_v7 = vadd.f32 %v67_v2, %v48_v4  ;;  %v90_v9 = vsel %vm89_vm2, %v84_v54, %v86_v52 }
 0x106   :  { %v88_v55 = vpop.permute.xlu1 %87  ;;  %v94_v16 = vadd.f32 %v90_v9, %v71_v7 }
 0x107   :  { %v111_v56 = vpop.permute.xlu0 %110  ;;  %v91_v12 = vsel %vm89_vm2, %v86_v52, %v88_v55 }
 0x108   :  { %v95_v11 = vadd.f32 %v91_v12, %v72_v14 }
 0x10a   :  { %v109_v57 = vpop.permute.xlu1 %108 }
 0x10b   :  { %v132_v58 = vpop.permute.xlu0 %131  ;;  %v114_v10 = vsel %vm112_vm3, %v109_v57, %v111_v56 }
 0x10c   :  { %v118_v19 = vadd.f32 %v114_v10, %v95_v11 }
 0x10e   :  { %v107_v59 = vpop.permute.xlu1 %106 }
 0x10f   :  { %v130_v60 = vpop.permute.xlu0 %129  ;;  %v113_v15 = vsel %vm112_vm3, %v107_v59, %v109_v57 }
 0x110   :  { %v117_v20 = vadd.f32 %v113_v15, %v94_v16  ;;  %v136_v22 = vsel %vm135_vm4, %v130_v60, %v132_v58 }
 0x112   :  { %v134_v0 = vpop.permute.xlu1 %133  ;;  %v140_v28 = vadd.f32 %v136_v22, %v117_v20 }
 0x113   :  { %v157_v3 = vpop.permute.xlu0 %156  ;;  %v137_v18 = vsel %vm135_vm4, %v132_v58, %v134_v0 }
 0x114   :  { %v141_v24 = vadd.f32 %v137_v18, %v118_v19 }
 0x116   :  { %v155_v8 = vpop.permute.xlu1 %154 }
 0x117   :  { %v178_v13 = vpop.permute.xlu0 %177  ;;  %v160_v23 = vsel %vm158_vm5, %v155_v8, %v157_v3 }
 0x118   :  { %v164_v29 = vadd.f32 %v160_v23, %v141_v24 }
 0x11a   :  { %v153_v17 = vpop.permute.xlu1 %152 }
 0x11b   :  { %v176_v21 = vpop.permute.xlu0 %175  ;;  %v159_v26 = vsel %vm158_vm5, %v153_v17, %v155_v8 }
 0x11c   :  { %v163_v31 = vadd.f32 %v159_v26, %v140_v28  ;;  %v182_v34 = vsel %vm181_vm6, %v176_v21, %v178_v13 }
 0x11e   :  { %v180_v25 = vpop.permute.xlu1 %179  ;;  %v186_v37 = vadd.f32 %v182_v34, %v163_v31 }
 0x11f   :  { %v183_v27 = vsel %vm181_vm6, %v178_v13, %v180_v25  ;;  %v203_v30 = vpop.permute.xlu0 %202 }
 0x120   :  { %v187_v32 = vadd.f32 %v183_v27, %v164_v29 }
 0x122   :  { %v201_v33 = vpop.permute.xlu1 %200 }
 0x123   :  { %v206_v35 = vsel %vm204_vm7, %v201_v33, %v203_v30 }
 0x124   :  { %v210_v36 = vadd.f32 %v206_v35, %v187_v32 }
 0x126   :  { %v199_v38 = vpop.permute.xlu1 %198  ;;  %220 = vmatprep.subr.mxu0 %v210_v36  ;;  %307 = vmatprep.subr.mxu1 %v210_v36 }
 0x127   :  { %v205_v39 = vsel %vm204_vm7, %v199_v38, %v201_v33 }
 0x128   :  { %v209_v40 = vadd.f32 %v205_v39, %v186_v37 }
 0x12a   :  { %221 = vmatpush1.msra.mxu0 %v209_v40  ;;  %308 = vmatpush1.msra.mxu1 %v209_v40 }
 0x12b   :  { %305 = vmatmul.mubr.msk.f32.vlgmr.msra.gmra.mrb[0].mxu0 %vm213_vm8, %v211_v41  ;;  %306 = vmatmul.mubr.msk.f32.vlgmr.msra.gmra.mrb[0].mxu1 %vm213_vm8, %v212_v42 }
 0x1fe   :  { %v286_v43 = vpop.f32.mrb[0].mxu0  ;;  %v292_v44 = vpop.f32.mrb[0].mxu1 }
 0x1ff   :  { %297 = vst [vmem:[%s430_s3] sm:$0xff] %v286_v43  ;;  %299 = vst [vmem:[%s430_s3 + $0x10] sm:$0xff] %v292_v44  ;;  %v288_v45 = vpop.f32.mrb[1].mxu0  ;;  %v294_v46 = vpop.f32.mrb[1].mxu1 }
 0x200   :  { %298 = vst [vmem:[%s430_s3 + $0x8] sm:$0xff] %v288_v45  ;;  %300 = vst [vmem:[%s430_s3 + $0x18] sm:$0xff] %v294_v46 }

</bundles_post_ra>
